<compile_context>
chip_gen: v7x
topology: tpu7x:2x2x1
jax: 0.10.0
libtpu: 0.0.40
codegen_flags: <defaults>
</compile_context>

<pallas_src>
import math
import numpy as np

import jax
import jax.numpy as jnp
from jax import lax
from jax.experimental import pallas as pl
from jax.experimental.pallas import tpu as pltpu  # noqa: F401  (TPU-specific tuning hooks)

# Small, module-consistent shapes.
B, S, D, V, F = 2, 8, 32, 64, 64   # batch, seq, hidden, vocab(=pos table size), ffn hidden
BS = B * S
NEG_INF = -1e9
EPS = 1e-5

# ---- packed constant-slab layout (all row offsets are multiples of 8, all tiles start at lane 0) ----
ROW_EMB = 0                 # (V, D)  fused token+position embedding table
ROW_WQ = ROW_EMB + V        # (D, D)  pre-scaled by 1/sqrt(D)
ROW_WK = ROW_WQ + D         # (D, D)
ROW_WV = ROW_WK + D         # (D, D)
ROW_WO = ROW_WV + D         # (D, D)
ROW_W1 = ROW_WO + D         # (D, F)
ROW_W2 = ROW_W1 + D         # (F, D)
ROW_VEC = ROW_W2 + F        # 8 rows: [b1 | b2 | ln1_g | ln1_b | ln2_g | ln2_b | 0 | 0]
SLAB_ROWS = ROW_VEC + 8     # 296 (multiple of 8)
SLAB_COLS = 128             # lane-padded

# Static block-diagonal batch structure (no cross-batch attention), built once at import time.
_SAME_BATCH = (np.arange(BS) // S)[:, None] == (np.arange(BS) // S)[None, :]   # (BS, BS) bool


def _layernorm(x, g, b):
    mu = jnp.mean(x, axis=-1, keepdims=True)
    var = jnp.mean((x - mu) ** 2, axis=-1, keepdims=True)
    return (x - mu) * lax.rsqrt(var + EPS) * g + b


def bart_encoder_kernel(ids_ref, bias_ref, slab_ref, out_ref):
    # --- static slices of the packed constant slab (all start at lane 0; free views) ---
    emb = slab_ref[ROW_EMB:ROW_EMB + V, :D]          # (V, D)
    wq = slab_ref[ROW_WQ:ROW_WQ + D, :D]             # (D, D), already scaled by 1/sqrt(D)
    wk = slab_ref[ROW_WK:ROW_WK + D, :D]
    wv = slab_ref[ROW_WV:ROW_WV + D, :D]
    wo = slab_ref[ROW_WO:ROW_WO + D, :D]
    w1 = slab_ref[ROW_W1:ROW_W1 + D, :F]             # (D, F)
    w2 = slab_ref[ROW_W2:ROW_W2 + F, :D]             # (F, D)
    b1 = slab_ref[ROW_VEC + 0:ROW_VEC + 1, :F]
    b2 = slab_ref[ROW_VEC + 1:ROW_VEC + 2, :D]
    ln1_g = slab_ref[ROW_VEC + 2:ROW_VEC + 3, :D]
    ln1_b = slab_ref[ROW_VEC + 3:ROW_VEC + 4, :D]
    ln2_g = slab_ref[ROW_VEC + 4:ROW_VEC + 5, :D]
    ln2_b = slab_ref[ROW_VEC + 5:ROW_VEC + 6, :D]

    # --- embedding: x = (tok_w + pos_w)[ids], gather as one-hot matmul on the MXU ---
    # TODO(synk): for a real BART vocab (~50k) replace the one-hot matmul with a scalar-prefetch
    #             (PrefetchScalarGridSpec) + per-row DMA gather; at V=64 the one-hot is fine.
    ids_col = ids_ref[...]                                        # (BS, 1) int32
    iota_v = lax.broadcasted_iota(jnp.int32, (BS, V), 1)          # (BS, V)
    onehot = (iota_v == ids_col).astype(jnp.float32)              # (BS, V)
    x = jnp.dot(onehot, emb, preferred_element_type=jnp.float32)  # (BS, D)

    # --- single-head masked self-attention (separate Q/K/V projections, lane-aligned tiles) ---
    q = jnp.dot(x, wq, preferred_element_type=jnp.float32)        # (BS, D), scale pre-folded
    k = jnp.dot(x, wk, preferred_element_type=jnp.float32)
    v = jnp.dot(x, wv, preferred_element_type=jnp.float32)

    scores = lax.dot_general(q, k, (((1,), (1,)), ((), ())),
                             preferred_element_type=jnp.float32)  # (BS, BS)
    scores = scores + bias_ref[...]                               # additive block-diag + padding bias

    scores = scores - jnp.max(scores, axis=-1, keepdims=True)
    p = jnp.exp(scores)
    inv_l = pl.reciprocal(jnp.sum(p, axis=-1, keepdims=True), approx=False)
    attn = p * inv_l
    ctx = jnp.dot(attn, v, preferred_element_type=jnp.float32)                # (BS, D)
    attn_out = jnp.dot(ctx, wo, preferred_element_type=jnp.float32)           # (BS, D)

    h = _layernorm(x + attn_out, ln1_g, ln1_b)

    # --- position-wise feed-forward (ReLU) ---
    ff = jnp.maximum(jnp.dot(h, w1, preferred_element_type=jnp.float32) + b1, 0.0)
    ff = jnp.dot(ff, w2, preferred_element_type=jnp.float32) + b2
    out_ref[...] = _layernorm(h + ff, ln2_g, ln2_b)


def prepare_params(params):
    """Hoisted out of the hot path: build the packed constant slab ONCE from the raw params."""
    (tok_w, pos_w, wq, wk, wv, wo, w1, b1, w2, b2,
     ln1_g, ln1_b, ln2_g, ln2_b) = params
    slab = jnp.zeros((SLAB_ROWS, SLAB_COLS), jnp.float32)
    slab = slab.at[ROW_EMB:ROW_EMB + V, :D].set(tok_w + pos_w)           # fused embedding table
    slab = slab.at[ROW_WQ:ROW_WQ + D, :D].set(wq * (1.0 / math.sqrt(D)))  # fold score scale
    slab = slab.at[ROW_WK:ROW_WK + D, :D].set(wk)
    slab = slab.at[ROW_WV:ROW_WV + D, :D].set(wv)
    slab = slab.at[ROW_WO:ROW_WO + D, :D].set(wo)
    slab = slab.at[ROW_W1:ROW_W1 + D, :F].set(w1)
    slab = slab.at[ROW_W2:ROW_W2 + F, :D].set(w2)
    slab = slab.at[ROW_VEC + 0, :F].set(b1[0])
    slab = slab.at[ROW_VEC + 1, :D].set(b2[0])
    slab = slab.at[ROW_VEC + 2, :D].set(ln1_g[0])
    slab = slab.at[ROW_VEC + 3, :D].set(ln1_b[0])
    slab = slab.at[ROW_VEC + 4, :D].set(ln2_g[0])
    slab = slab.at[ROW_VEC + 5, :D].set(ln2_b[0])
    return slab


@jax.jit
def _encoder_states(input_ids, attention_mask, slab):
    ids2 = input_ids.astype(jnp.int32).reshape(BS, 1)                    # (BS, 1)

    # Additive attention bias: 0 where attention is allowed, -1e9 otherwise.
    key_valid = attention_mask.reshape(BS) > 0                           # (BS,)
    valid = jnp.asarray(_SAME_BATCH) & key_valid[None, :]                # (BS, BS)
    bias = jnp.where(valid, 0.0, NEG_INF).astype(jnp.float32)            # (BS, BS), ~1 KB

    # Single kernel invocation (no grid): whole problem + packed slab is ~200 KB, far below VMEM.
    out_flat = pl.pallas_call(
        bart_encoder_kernel,
        out_shape=jax.ShapeDtypeStruct((BS, D), jnp.float32),
    )(ids2, bias, slab)
    return out_flat.reshape(B, S, D)


def bart_encoder_forward(input_ids, attention_mask, slab):
    """Returns (encoder_states, [], []) matching _BartEncoderWrapper.forward."""
    return _encoder_states(input_ids, attention_mask, slab), [], []


def init_params(key):
    ks = jax.random.split(key, 8)
    scale = 0.02
    tok_w = scale * jax.random.normal(ks[0], (V, D), jnp.float32)
    pos_w = scale * jax.random.normal(ks[1], (V, D), jnp.float32)
    wq = scale * jax.random.normal(ks[2], (D, D), jnp.float32)
    wk = scale * jax.random.normal(ks[3], (D, D), jnp.float32)
    wv = scale * jax.random.normal(ks[4], (D, D), jnp.float32)
    wo = scale * jax.random.normal(ks[5], (D, D), jnp.float32)
    w1 = scale * jax.random.normal(ks[6], (D, F), jnp.float32)
    b1 = jnp.zeros((1, F), jnp.float32)
    w2 = scale * jax.random.normal(ks[7], (F, D), jnp.float32)
    b2 = jnp.zeros((1, D), jnp.float32)
    ln1_g = jnp.ones((1, D), jnp.float32)
    ln1_b = jnp.zeros((1, D), jnp.float32)
    ln2_g = jnp.ones((1, D), jnp.float32)
    ln2_b = jnp.zeros((1, D), jnp.float32)
    return (tok_w, pos_w, wq, wk, wv, wo, w1, b1, w2, b2,
            ln1_g, ln1_b, ln2_g, ln2_b)


def reference_forward(input_ids, attention_mask, params):
    (tok_w, pos_w, wq, wk, wv, wo, w1, b1, w2, b2,
     ln1_g, ln1_b, ln2_g, ln2_b) = params
    ids = input_ids.astype(jnp.int32)
    x = tok_w[ids] + pos_w[ids]                                   # (B, S, D)
    q = x @ wq
    k = x @ wk
    v = x @ wv
    scores = jnp.einsum("bqd,bkd->bqk", q, k) / math.sqrt(D)
    key_mask = attention_mask.astype(jnp.float32)[:, None, :]
    scores = jnp.where(key_mask > 0, scores, NEG_INF)
    scores = scores - jnp.max(scores, axis=-1, keepdims=True)
    p = jnp.exp(scores)
    attn = p / jnp.sum(p, axis=-1, keepdims=True)
    attn_out = jnp.einsum("bqk,bkd->bqd", attn, v) @ wo
    h = _layernorm(x + attn_out, ln1_g, ln1_b)
    ff = jnp.maximum(h @ w1 + b1, 0.0) @ w2 + b2
    return _layernorm(h + ff, ln2_g, ln2_b)


if __name__ == "__main__":
    key = jax.random.PRNGKey(0)
    k_ids, k_param = jax.random.split(key)

    input_ids = jax.random.randint(k_ids, (B, S), 0, V, dtype=jnp.int32)
    # lengths: batch 0 full, batch 1 has 2 padding positions at the end.
    attention_mask = jnp.array(
        [[1] * S, [1] * (S - 2) + [0, 0]], dtype=jnp.int32)

    params = init_params(k_param)
    slab = jax.block_until_ready(prepare_params(params))   # one-time packing, outside the hot path

    encoder_states, extra_a, extra_b = bart_encoder_forward(
        input_ids, attention_mask, slab)
    encoder_states = jax.block_until_ready(encoder_states)

    ref = reference_forward(input_ids, attention_mask, params)
    assert encoder_states.shape == (B, S, D)
    assert jnp.allclose(encoder_states, ref, atol=1e-4, rtol=1e-4), (
        "Pallas kernel output mismatch vs pure-JAX reference")
    assert extra_a == [] and extra_b == []

    print("KERNEL_OK")
</pallas_src>

<mosaic_0001>
module attributes {stable_mosaic.version = 11 : i64} {
  func.func @bart_encoder_kernel(%arg0: memref<16x1xi32, #tpu.memory_space<vmem>>, %arg1: memref<16x16xf32, #tpu.memory_space<vmem>>, %arg2: memref<296x128xf32, #tpu.memory_space<vmem>>, %arg3: memref<16x32xf32, #tpu.memory_space<vmem>>) attributes {dimension_semantics = [], scalar_prefetch = 0 : i64, scratch_operands = 0 : i64, tpu.core_type = #tpu.core_type<tc>} {
    %c0 = arith.constant 0 : index
    %c0_0 = arith.constant 0 : index
    %0 = vector.load %arg2[%c0, %c0_0] : memref<296x128xf32, #tpu.memory_space<vmem>>, vector<64x32xf32>
    %c64 = arith.constant 64 : index
    %c0_1 = arith.constant 0 : index
    %1 = vector.load %arg2[%c64, %c0_1] : memref<296x128xf32, #tpu.memory_space<vmem>>, vector<32x32xf32>
    %c96 = arith.constant 96 : index
    %c0_2 = arith.constant 0 : index
    %2 = vector.load %arg2[%c96, %c0_2] : memref<296x128xf32, #tpu.memory_space<vmem>>, vector<32x32xf32>
    %c128 = arith.constant 128 : index
    %c0_3 = arith.constant 0 : index
    %3 = vector.load %arg2[%c128, %c0_3] : memref<296x128xf32, #tpu.memory_space<vmem>>, vector<32x32xf32>
    %c160 = arith.constant 160 : index
    %c0_4 = arith.constant 0 : index
    %4 = vector.load %arg2[%c160, %c0_4] : memref<296x128xf32, #tpu.memory_space<vmem>>, vector<32x32xf32>
    %c192 = arith.constant 192 : index
    %c0_5 = arith.constant 0 : index
    %5 = vector.load %arg2[%c192, %c0_5] : memref<296x128xf32, #tpu.memory_space<vmem>>, vector<32x64xf32>
    %c224 = arith.constant 224 : index
    %c0_6 = arith.constant 0 : index
    %6 = vector.load %arg2[%c224, %c0_6] : memref<296x128xf32, #tpu.memory_space<vmem>>, vector<64x32xf32>
    %c288 = arith.constant 288 : index
    %c0_7 = arith.constant 0 : index
    %7 = vector.load %arg2[%c288, %c0_7] : memref<296x128xf32, #tpu.memory_space<vmem>>, vector<1x64xf32>
    %c289 = arith.constant 289 : index
    %c0_8 = arith.constant 0 : index
    %8 = vector.load %arg2[%c289, %c0_8] : memref<296x128xf32, #tpu.memory_space<vmem>>, vector<1x32xf32>
    %c290 = arith.constant 290 : index
    %c0_9 = arith.constant 0 : index
    %9 = vector.load %arg2[%c290, %c0_9] : memref<296x128xf32, #tpu.memory_space<vmem>>, vector<1x32xf32>
    %c291 = arith.constant 291 : index
    %c0_10 = arith.constant 0 : index
    %10 = vector.load %arg2[%c291, %c0_10] : memref<296x128xf32, #tpu.memory_space<vmem>>, vector<1x32xf32>
    %c292 = arith.constant 292 : index
    %c0_11 = arith.constant 0 : index
    %11 = vector.load %arg2[%c292, %c0_11] : memref<296x128xf32, #tpu.memory_space<vmem>>, vector<1x32xf32>
    %c293 = arith.constant 293 : index
    %c0_12 = arith.constant 0 : index
    %12 = vector.load %arg2[%c293, %c0_12] : memref<296x128xf32, #tpu.memory_space<vmem>>, vector<1x32xf32>
    %c0_13 = arith.constant 0 : index
    %c0_14 = arith.constant 0 : index
    %13 = vector.load %arg0[%c0_13, %c0_14] : memref<16x1xi32, #tpu.memory_space<vmem>>, vector<16x1xi32>
    %14 = tpu.iota {dimensions = array<i32: 1>} : vector<16x64xi32>
    %15 = vector.broadcast %13 : vector<16x1xi32> to vector<16x64xi32>
    %16 = arith.cmpi eq, %14, %15 : vector<16x64xi32>
    %17 = arith.extui %16 : vector<16x64xi1> to vector<16x64xi32>
    %18 = arith.sitofp %17 : vector<16x64xi32> to vector<16x64xf32>
    %cst = arith.constant dense<0.000000e+00> : vector<16x32xf32>
    %19 = tpu.matmul %18, %0, %cst {dimension_numbers = #tpu.dot_dimension_numbers<[1], [0], [0], [1], [0, 0, 1, 1], [], []>} : vector<16x64xf32>, vector<64x32xf32>, vector<16x32xf32> -> vector<16x32xf32>
    %cst_15 = arith.constant dense<0.000000e+00> : vector<16x32xf32>
    %20 = tpu.matmul %19, %1, %cst_15 {dimension_numbers = #tpu.dot_dimension_numbers<[1], [0], [0], [1], [0, 0, 1, 1], [], []>} : vector<16x32xf32>, vector<32x32xf32>, vector<16x32xf32> -> vector<16x32xf32>
    %cst_16 = arith.constant dense<0.000000e+00> : vector<16x32xf32>
    %21 = tpu.matmul %19, %2, %cst_16 {dimension_numbers = #tpu.dot_dimension_numbers<[1], [0], [0], [1], [0, 0, 1, 1], [], []>} : vector<16x32xf32>, vector<32x32xf32>, vector<16x32xf32> -> vector<16x32xf32>
    %cst_17 = arith.constant dense<0.000000e+00> : vector<16x32xf32>
    %22 = tpu.matmul %19, %3, %cst_17 {dimension_numbers = #tpu.dot_dimension_numbers<[1], [0], [0], [1], [0, 0, 1, 1], [], []>} : vector<16x32xf32>, vector<32x32xf32>, vector<16x32xf32> -> vector<16x32xf32>
    %cst_18 = arith.constant dense<0.000000e+00> : vector<16x16xf32>
    %23 = tpu.matmul %20, %21, %cst_18 {dimension_numbers = #tpu.dot_dimension_numbers<[1], [1], [0], [0], [0, 0, 1, 0], [], []>} : vector<16x32xf32>, vector<16x32xf32>, vector<16x16xf32> -> vector<16x16xf32>
    %c0_19 = arith.constant 0 : index
    %c0_20 = arith.constant 0 : index
    %24 = vector.load %arg1[%c0_19, %c0_20] : memref<16x16xf32, #tpu.memory_space<vmem>>, vector<16x16xf32>
    %25 = arith.addf %23, %24 : vector<16x16xf32>
    %cst_21 = arith.constant dense<0xFF800000> : vector<16xf32>
    %26 = vector.multi_reduction <maximumf>, %25, %cst_21 [1] : vector<16x16xf32> to vector<16xf32>
    %27 = vector.shape_cast %26 : vector<16xf32> to vector<16x1xf32>
    %28 = vector.broadcast %27 : vector<16x1xf32> to vector<16x16xf32>
    %29 = arith.subf %25, %28 : vector<16x16xf32>
    %30 = math.exp %29 : vector<16x16xf32>
    %cst_22 = arith.constant dense<0.000000e+00> : vector<16xf32>
    %31 = vector.multi_reduction <add>, %30, %cst_22 [1] : vector<16x16xf32> to vector<16xf32>
    %32 = vector.shape_cast %31 : vector<16xf32> to vector<16x1xf32>
    %33 = tpu.reciprocal %32 : vector<16x1xf32> -> vector<16x1xf32>
    %34 = vector.broadcast %33 : vector<16x1xf32> to vector<16x16xf32>
    %35 = arith.mulf %30, %34 : vector<16x16xf32>
    %cst_23 = arith.constant dense<0.000000e+00> : vector<16x32xf32>
    %36 = tpu.matmul %35, %22, %cst_23 {dimension_numbers = #tpu.dot_dimension_numbers<[1], [0], [0], [1], [0, 0, 1, 1], [], []>} : vector<16x16xf32>, vector<16x32xf32>, vector<16x32xf32> -> vector<16x32xf32>
    %cst_24 = arith.constant dense<0.000000e+00> : vector<16x32xf32>
    %37 = tpu.matmul %36, %4, %cst_24 {dimension_numbers = #tpu.dot_dimension_numbers<[1], [0], [0], [1], [0, 0, 1, 1], [], []>} : vector<16x32xf32>, vector<32x32xf32>, vector<16x32xf32> -> vector<16x32xf32>
    %38 = arith.addf %19, %37 : vector<16x32xf32>
    %cst_25 = arith.constant dense<0.000000e+00> : vector<16xf32>
    %39 = vector.multi_reduction <add>, %38, %cst_25 [1] : vector<16x32xf32> to vector<16xf32>
    %40 = vector.shape_cast %39 : vector<16xf32> to vector<16x1xf32>
    %cst_26 = arith.constant 3.200000e+01 : f32
    %41 = vector.broadcast %cst_26 : f32 to vector<16x1xf32>
    %42 = arith.divf %40, %41 : vector<16x1xf32>
    %43 = vector.broadcast %42 : vector<16x1xf32> to vector<16x32xf32>
    %44 = arith.subf %38, %43 : vector<16x32xf32>
    %45 = arith.mulf %44, %44 : vector<16x32xf32>
    %cst_27 = arith.constant dense<0.000000e+00> : vector<16xf32>
    %46 = vector.multi_reduction <add>, %45, %cst_27 [1] : vector<16x32xf32> to vector<16xf32>
    %47 = vector.shape_cast %46 : vector<16xf32> to vector<16x1xf32>
    %cst_28 = arith.constant 3.200000e+01 : f32
    %48 = vector.broadcast %cst_28 : f32 to vector<16x1xf32>
    %49 = arith.divf %47, %48 : vector<16x1xf32>
    %50 = vector.broadcast %42 : vector<16x1xf32> to vector<16x32xf32>
    %51 = arith.subf %38, %50 : vector<16x32xf32>
    %cst_29 = arith.constant 9.99999974E-6 : f32
    %52 = vector.broadcast %cst_29 : f32 to vector<16x1xf32>
    %53 = arith.addf %49, %52 : vector<16x1xf32>
    %54 = math.rsqrt %53 : vector<16x1xf32>
    %55 = vector.broadcast %54 : vector<16x1xf32> to vector<16x32xf32>
    %56 = arith.mulf %51, %55 : vector<16x32xf32>
    %57 = vector.broadcast %9 : vector<1x32xf32> to vector<16x32xf32>
    %58 = arith.mulf %56, %57 : vector<16x32xf32>
    %59 = vector.broadcast %10 : vector<1x32xf32> to vector<16x32xf32>
    %60 = arith.addf %58, %59 : vector<16x32xf32>
    %cst_30 = arith.constant dense<0.000000e+00> : vector<16x64xf32>
    %61 = tpu.matmul %60, %5, %cst_30 {dimension_numbers = #tpu.dot_dimension_numbers<[1], [0], [0], [1], [0, 0, 1, 1], [], []>} : vector<16x32xf32>, vector<32x64xf32>, vector<16x64xf32> -> vector<16x64xf32>
    %62 = vector.broadcast %7 : vector<1x64xf32> to vector<16x64xf32>
    %63 = arith.addf %61, %62 : vector<16x64xf32>
    %cst_31 = arith.constant 0.000000e+00 : f32
    %64 = vector.broadcast %cst_31 : f32 to vector<16x64xf32>
    %65 = arith.maximumf %63, %64 : vector<16x64xf32>
    %cst_32 = arith.constant dense<0.000000e+00> : vector<16x32xf32>
    %66 = tpu.matmul %65, %6, %cst_32 {dimension_numbers = #tpu.dot_dimension_numbers<[1], [0], [0], [1], [0, 0, 1, 1], [], []>} : vector<16x64xf32>, vector<64x32xf32>, vector<16x32xf32> -> vector<16x32xf32>
    %67 = vector.broadcast %8 : vector<1x32xf32> to vector<16x32xf32>
    %68 = arith.addf %66, %67 : vector<16x32xf32>
    %69 = arith.addf %60, %68 : vector<16x32xf32>
    %cst_33 = arith.constant dense<0.000000e+00> : vector<16xf32>
    %70 = vector.multi_reduction <add>, %69, %cst_33 [1] : vector<16x32xf32> to vector<16xf32>
    %71 = vector.shape_cast %70 : vector<16xf32> to vector<16x1xf32>
    %cst_34 = arith.constant 3.200000e+01 : f32
    %72 = vector.broadcast %cst_34 : f32 to vector<16x1xf32>
    %73 = arith.divf %71, %72 : vector<16x1xf32>
    %74 = vector.broadcast %73 : vector<16x1xf32> to vector<16x32xf32>
    %75 = arith.subf %69, %74 : vector<16x32xf32>
    %76 = arith.mulf %75, %75 : vector<16x32xf32>
    %cst_35 = arith.constant dense<0.000000e+00> : vector<16xf32>
    %77 = vector.multi_reduction <add>, %76, %cst_35 [1] : vector<16x32xf32> to vector<16xf32>
    %78 = vector.shape_cast %77 : vector<16xf32> to vector<16x1xf32>
    %cst_36 = arith.constant 3.200000e+01 : f32
    %79 = vector.broadcast %cst_36 : f32 to vector<16x1xf32>
    %80 = arith.divf %78, %79 : vector<16x1xf32>
    %81 = vector.broadcast %73 : vector<16x1xf32> to vector<16x32xf32>
    %82 = arith.subf %69, %81 : vector<16x32xf32>
    %cst_37 = arith.constant 9.99999974E-6 : f32
    %83 = vector.broadcast %cst_37 : f32 to vector<16x1xf32>
    %84 = arith.addf %80, %83 : vector<16x1xf32>
    %85 = math.rsqrt %84 : vector<16x1xf32>
    %86 = vector.broadcast %85 : vector<16x1xf32> to vector<16x32xf32>
    %87 = arith.mulf %82, %86 : vector<16x32xf32>
    %88 = vector.broadcast %11 : vector<1x32xf32> to vector<16x32xf32>
    %89 = arith.mulf %87, %88 : vector<16x32xf32>
    %90 = vector.broadcast %12 : vector<1x32xf32> to vector<16x32xf32>
    %91 = arith.addf %89, %90 : vector<16x32xf32>
    %c0_38 = arith.constant 0 : index
    %c0_39 = arith.constant 0 : index
    %92 = vector.load %arg3[%c0_38, %c0_39] : memref<16x32xf32, #tpu.memory_space<vmem>>, vector<16x32xf32>
    tpu.vector_store %arg3[%c0_38, %c0_39], %91 {strides = array<i32>} : memref<16x32xf32, #tpu.memory_space<vmem>>, vector<16x32xf32>,
    return
  }
}

</mosaic_0001>

<bundles_post_ra>
// kernel: _encoder_states.1
= control target key start
LH: loop header
LB: loop body
LE: loop exit
PB: predicated region body
PF: predicated region fallthrough
CT: control target
= control target key end

     0   :  { %8 = vsyncpa [#allocation3], 0  ;;  %s1407_s0 = inlined_call_operand.vmem [shape: s32[16,1], index: 0, kind: input, shape index: {}]   ;;  %s1408_s1 = inlined_call_operand.vmem [shape: f32[16,16], index: 1, kind: input, shape index: {}]   ;;  %s1409_s2 = inlined_call_operand.hbm [shape: f32[296,128], index: 2, kind: input, shape index: {}]   ;;  %s1410_s3 = inlined_call_operand.hbm [shape: f32[16,32], index: 3, kind: output, shape index: {}]  }
   0x1   :  { %9 = vsyncpa [#allocation4], 0  ;;  %s1293_s12 = smov [#allocation2]   ;;  %s1245_s16 = scalar_lea.hbm %s1409_s2, 4736 }
   0x2   :  { %s19_s13 = sshll.u32 %s1293_s12, 4  ;;  %p1246_p0 = scmp.ne.s32.totalorder %s1409_s2, %s1245_s16  ;;  %s20_s13 = int_to_ptr.vmem [resolvable:$true] %s19_s13 }
   0x3   :  { %p1249_p1 = scmp.lt.u32.totalorder %s1245_s16, %s1409_s2 }
   0x5   :  { %p1251_p2 = pnand %p1249_p1, %p1246_p0 }
   0x7   :  { %1254 = shalt.err (!%p1251_p2)
}
   0x8   :  { %s1255_s21 = scalar_lea.vmem %s20_s13, 4736  ;;  %p1260_p4 = scmp.lt.s32.totalorder %s20_s13, %s20_s13 }
   0x9   :  { %p1256_p3 = scmp.ne.s32.totalorder %s20_s13, %s1255_s21  ;;  %p1261_p5 = scmp.lt.s32.totalorder %s1255_s21, %s1255_s21 }
   0xb   :  { %p1262_p6 = por %p1261_p5, %p1260_p4 }
   0xd   :  { %p1263_p7 = pnand %p1262_p6, %p1256_p3 }
   0xf   :  { %1266 = shalt.err (!%p1263_p7)
}
  0x10   :  { %s1294_s22 = smov 128   ;;  %s1295_s23 = smov 8  }
  0x11   :  { %25 = dma.hbm_to_vmem [thread:$0]  %s1409_s2, 4736, %s20_s13, [#allocation3], %s1294_s22, %s1294_s22, %s1295_s23  }
  0x12   :  { %1289 = dma.done.wait [#allocation3], 4736  }
  0x13   :  { %1290 = vsyncadd [#allocation3], 4294962560  ;;  %v1296_v0 = vmov 0   ;;  %v71_v1 = vld [vmem:[%s1407_s0] sm:$0xff]  ;;  %v30_v3 = vld [vmem:[#allocation2 + $0x8] sm:$0xff]  ;;  %v73_v24 = vlaneseq  ;;  %vm87_vm0 = vcmask 523264  }
  0x14   :  { %1228 = vset.pattern.permute.xlu0 %v1296_v0  ;;  %v29_v2 = vld [vmem:[#allocation2] sm:$0xff]  ;;  %v31_v4 = vld [vmem:[#allocation2 + $0x10] sm:$0xff]  ;;  %v32_v5 = vld [vmem:[#allocation2 + $0x18] sm:$0xff]  ;;  %v1297_v27 = vmov 0.0   ;;  %vm169_vm3 = vcmask 261120   ;;  %vm490_vm5 = vcmask 130048  }
  0x15   :  { %76 = vperm.xlu0 %1228, %v71_v1   ;;  %v72_v6 = vld [vmem:[%s1407_s0 + $0x8] sm:$0xff]  ;;  %v1140_v7 = vpack.c.bf16 %v30_v3, %v29_v2  ;;  %v1144_v8 = vpack.c.bf16 %v32_v5, %v31_v4  ;;  %v33_v9 = vld [vmem:[#allocation2 + $0x20] sm:$0xff]  ;;  %v35_v12 = vld [vmem:[#allocation2 + $0x30] sm:$0xff]  ;;  %v74_v25 = vand.u32 127, %v73_v24 }
  0x16   :  { %v34_v10 = vld [vmem:[#allocation2 + $0x28] sm:$0xff]  ;;  %v36_v13 = vld [vmem:[#allocation2 + $0x38] sm:$0xff]  ;;  %v41_v14 = vld [vmem:[#allocation2 + $0x60] sm:$0xff] }
  0x17   :  { %1141 = vmatprep.subr.bf16.mxu0 %v1140_v7  ;;  %v1148_v11 = vpack.c.bf16 %v34_v10, %v33_v9  ;;  %v42_v15 = vld [vmem:[#allocation2 + $0x68] sm:$0xff]  ;;  %v1152_v17 = vpack.c.bf16 %v36_v13, %v35_v12  ;;  %v37_v18 = vld [vmem:[#allocation2 + $0x40] sm:$0xff]  ;;  %v43_v20 = vld [vmem:[#allocation2 + $0x70] sm:$0xff] }
  0x18   :  { %1143 = vmatpush3.bf16.msra.mxu0 %v1140_v7  ;;  %v1164_v16 = vpack.c.bf16 %v42_v15, %v41_v14  ;;  %v38_v19 = vld [vmem:[#allocation2 + $0x48] sm:$0xff]  ;;  %v44_v21 = vld [vmem:[#allocation2 + $0x78] sm:$0xff]  ;;  %v39_v29 = vld [vmem:[#allocation2 + $0x50] sm:$0xff] }
  0x19   :  { %79 = vperm.xlu0 %1228, %v72_v6   ;;  %1145 = vmatprep.subr.bf16.mxu0 %v1144_v8  ;;  %v1168_v22 = vpack.c.bf16 %v44_v21, %v43_v20  ;;  %v1156_v23 = vpack.c.bf16 %v38_v19, %v37_v18  ;;  %v40_v30 = vld [vmem:[#allocation2 + $0x58] sm:$0xff]  ;;  %v45_v34 = vld [vmem:[#allocation2 + $0x80] sm:$0xff]  ;;  %v46_v35 = vld [vmem:[#allocation2 + $0x88] sm:$0xff] }
  0x1a   :  { %1165 = vmatprep.subr.bf16.mxu1 %v1164_v16  ;;  %v1160_v32 = vpack.c.bf16 %v40_v30, %v39_v29  ;;  %v1172_v36 = vpack.c.bf16 %v46_v35, %v45_v34  ;;  %v47_v37 = vld [vmem:[#allocation2 + $0x90] sm:$0xff]  ;;  %v48_v38 = vld [vmem:[#allocation2 + $0x98] sm:$0xff]  ;;  %vm1181_vm4 = vmpackc.low %vm169_vm3, %vm169_vm3 }
  0x1b   :  { %1167 = vmatpush3.bf16.msra.mxu1 %v1164_v16  ;;  %v1176_v41 = vpack.c.bf16 %v48_v38, %v47_v37  ;;  %v401_v50 = vld [vmem:[%s1408_s1] sm:$0xff]  ;;  %v402_v52 = vld [vmem:[%s1408_s1 + $0x8] sm:$0xff]  ;;  %v51_v6 = vld [vmem:[#allocation2 + $0xb0] sm:$0xff]  ;;  %s1298_s1 = smov [#allocation5]  }
  0x1c   :  { %1147 = vmatpush3.bf16.msra.mxu0 %v1144_v8  ;;  %1169 = vmatprep.subr.bf16.mxu1 %v1168_v22  ;;  %v49_v4 = vld [vmem:[#allocation2 + $0xa0] sm:$0xff]  ;;  %v50_v5 = vld [vmem:[#allocation2 + $0xa8] sm:$0xff]  ;;  %v52_v8 = vld [vmem:[#allocation2 + $0xb8] sm:$0xff]  ;;  %s935_s5 = sshll.u32 %s1298_s1, 4  ;;  %s936_s5 = int_to_ptr.vmem [resolvable:$true] %s935_s5 }
  0x1d   :  { %1149 = vmatprep.subr.bf16.mxu0 %v1148_v11  ;;  %v1190_v7 = vpack.c.bf16 %v50_v5, %v49_v4  ;;  %v1194_v9 = vpack.c.bf16 %v52_v8, %v51_v6  ;;  %v53_v34 = vld [vmem:[#allocation2 + $0xc0] sm:$0xff]  ;;  %v54_v35 = vld [vmem:[#allocation2 + $0xc8] sm:$0xff]  ;;  %v55_v37 = vld [vmem:[#allocation2 + $0xd0] sm:$0xff]  ;;  %s1267_s6 = scalar_lea.vmem %s936_s5, 256  ;;  %p1272_p9 = scmp.lt.s32.totalorder %s936_s5, %s936_s5 }
  0x1e   :  { %v56_v38 = vld [vmem:[#allocation2 + $0xd8] sm:$0xff]  ;;  %v967_v4 = vld [vmem:[#allocation2 + $0x120] ss:$0 sm:$0xff]  ;;  %p1268_p8 = scmp.ne.s32.totalorder %s936_s5, %s1267_s6  ;;  %p1273_p10 = scmp.lt.s32.totalorder %s1267_s6, %s1267_s6 }
  0x1f   :  { %1171 = vmatpush3.bf16.msra.mxu1 %v1168_v22 }
  0x20   :  { %1151 = vmatpush3.bf16.msra.mxu0 %v1148_v11  ;;  %p1274_p11 = por %p1273_p10, %p1272_p9 }
  0x21   :  { %1153 = vmatprep.subr.bf16.mxu0 %v1152_v17 }
  0x22   :  { %p1275_p12 = pnand %p1274_p11, %p1268_p8 }
  0x24   :  { %1155 = vmatpush3.bf16.msra.mxu0 %v1152_v17 }
  0x25   :  { %1157 = vmatprep.subr.bf16.mxu0 %v1156_v23 }
  0x94   :  { %v77_v26 = vpop.permute.xlu0 %76 }
  0x95   :  { %vm81_vm1 = vcmp.eq.s32.totalorder %v74_v25, %v77_v26 }
  0x96   :  { %v947_v28 = vsel %vm81_vm1, 1.0, %v1297_v27 }
  0x97   :  { %1049 = vmatprep.mubr.msk.f32.mxu0 %vm87_vm0, %v947_v28 }
  0x98   :  { %v80_v31 = vpop.permute.xlu0 %79 }
  0x99   :  { %vm82_vm2 = vcmp.eq.s32.totalorder %v74_v25, %v80_v31 }
  0x9a   :  { %v948_v33 = vsel %vm82_vm2, 1.0, %v1297_v27 }
  0x9b   :  { %1050 = vmatmul.mubr.msk.f32.vlgmr.msra.gmra.mrb[0].mxu0 %vm87_vm0, %v948_v33 }
  0x9c   :  { %1159 = vmatpush3.bf16.msra.mxu0 %v1156_v23 }
  0x9d   :  { %1161 = vmatprep.subr.bf16.mxu0 %v1160_v32 }
  0xa0   :  { %1163 = vmatpush3.bf16.msra.mxu0 %v1160_v32 }
  0xa1   :  { %1173 = vmatprep.subr.bf16.mxu0 %v1172_v36 }
 0x16e   :  { %v1342_v39 = vpop.f32.mrb[0].mxu0 }
 0x16f   :  { %v1344_v40 = vpop.f32.mrb[1].mxu0 }
 0x170   :  { %1060 = vmatprep.mubr.msk.f32.mxu0 %vm169_vm3, %v1344_v40  ;;  %1071 = vmatprep.mubr.msk.f32.mxu1 %vm169_vm3, %v1344_v40 }
 0x171   :  { %1061 = vmatmul.mubr.msk.f32.vlgmr.msra.gmra.mrb[2].mxu0 %vm169_vm3, %v1342_v39  ;;  %1072 = vmatmul.mubr.msk.f32.vlgmr.msra.gmra.mrb[0].mxu1 %vm169_vm3, %v1342_v39 }
 0x172   :  { %1175 = vmatpush3.bf16.msra.mxu0 %v1172_v36  ;;  %1082 = vmatprep.mubr.msk.f32.mxu0 %vm169_vm3, %v1344_v40  ;;  %v1198_v36 = vpack.c.bf16 %v54_v35, %v53_v34 }
 0x173   :  { %1177 = vmatprep.subr.bf16.mxu0 %v1176_v41 }
 0x176   :  { %1179 = vmatpush3.bf16.msra.mxu0 %v1176_v41  ;;  %v58_v41 = vld [vmem:[#allocation2 + $0xe8] sm:$0xff] }
 0x179   :  { %1083 = vmatmul.mubr.msk.f32.vlgmr.msra.gmra.mrb[4].mxu0 %vm169_vm3, %v1342_v39 }
 0x244   :  { %v1062_v42 = vpop.f32.mrb[2].mxu0  ;;  %v1073_v43 = vpop.f32.mrb[0].mxu1 }
 0x245   :  { %v242_v44 = vpop.f32.mrb[3].mxu0  ;;  %v317_v45 = vpop.f32.mrb[1].mxu1 }
 0x246   :  { %v1180_v46 = vpack.c.bf16 %v1073_v43, %v317_v45  ;;  %1089 = vmatprep.mubr.msk.f32.mxu1 %vm169_vm3, %v242_v44  ;;  %v60_v44 = vld [vmem:[#allocation2 + $0xf8] sm:$0xff] }
 0x248   :  { %1182 = vmatprep.subr.msk.bf16.mxu1 %vm1181_vm4, %v1180_v46 }
 0x249   :  { %1185 = vmatpush3.bf16.xpose.msk.msra.mxu1 %vm1181_vm4, %v1180_v46  ;;  %v61_v46 = vld [vmem:[#allocation2 + $0x100] sm:$0xff] }
 0x24a   :  { %1191 = vmatprep.subr.bf16.mxu1 %v1190_v7 }
 0x24c   :  { %v1084_v47 = vpop.f32.mrb[4].mxu0 }
 0x24d   :  { %v392_v48 = vpop.f32.mrb[5].mxu0 }
 0x24e   :  { %v1186_v49 = vpack.c.bf16 %v1084_v47, %v392_v48  ;;  %v62_v47 = vld [vmem:[#allocation2 + $0x108] sm:$0xff] }
 0x24f   :  { %v1214_v48 = vpack.c.bf16 %v62_v47, %v61_v46 }
 0x250   :  { %1187 = vmatprep.subr.bf16.mxu0 %v1186_v49  ;;  %1090 = vmatmul.mubr.msk.f32.vlgmr.msra.gmra.mrb[2].mxu1 %vm169_vm3, %v1062_v42  ;;  %v59_v42 = vld [vmem:[#allocation2 + $0xf0] sm:$0xff] }
 0x251   :  { %1189 = vmatpush3.bf16.msra.mxu0 %v1186_v49  ;;  %1193 = vmatpush3.bf16.msra.mxu1 %v1190_v7  ;;  %v1210_v45 = vpack.c.bf16 %v60_v44, %v59_v42 }
 0x252   :  { %1195 = vmatprep.subr.bf16.mxu1 %v1194_v9  ;;  %1199 = vmatprep.subr.bf16.mxu0 %v1198_v36 }
 0x255   :  { %1197 = vmatpush3.bf16.msra.mxu1 %v1194_v9 }
 0x323   :  { %v1091_v51 = vpop.f32.mrb[2].mxu1 }
 0x324   :  { %v481_v53 = vpop.f32.mrb[3].mxu1  ;;  %v487_v55 = vadd.f32 %v1091_v51, %v402_v52 }
 0x325   :  { %v482_v54 = vadd.f32 %v481_v53, %v401_v50 }
 0x326   :  { %v494_v57 = vsel %vm490_vm5, %v487_v55, -inf }
 0x327   :  { %v491_v56 = vsel %vm490_vm5, %v482_v54, -inf }
 0x328   :  { %492 = vmax.xlane.f32.xlu1 %v491_v56  ;;  %v965_v56 = vld [vmem:[#allocation2 + $0x122] ss:$0 sm:$0xff] }
 0x32c   :  { %495 = vmax.xlane.f32.xlu1 %v494_v57 }
 0x3b5   :  { %v493_v58 = vpop.xlane.xlu1 %492 }
 0x3b6   :  { %v497_v59 = vsub.f32 %v482_v54, %v493_v58  ;;  %v966_v58 = vld [vmem:[#allocation2 + $0x123] ss:$0 sm:$0xff] }
 0x3b8   :  { %v499_v60 = vmul.f32 1.442695, %v497_v59 }
 0x3b9   :  { %v496_v61 = vpop.xlane.xlu1 %495 }
 0x3ba   :  { %1229 = vpow2.f32 %v499_v60  ;;  %v498_v62 = vsub.f32 %v487_v55, %v496_v61 }
 0x3bc   :  { %v501_v63 = vmul.f32 1.442695, %v498_v62 }
 0x3be   :  { %1231 = vpow2.f32 %v501_v63 }
 0x3c4   :  { %v1230_v0 = vpop.eup %1229 }
 0x3c5   :  { %v503_v1 = vsel %vm490_vm5, %v1230_v0, 0.0 }
 0x3c6   :  { %504 = vadd.xlane.f32.xlu0 %v503_v1  ;;  %v63_v1 = vld [vmem:[#allocation2 + $0x110] sm:$0xff] }
 0x3c8   :  { %v1232_v2 = vpop.eup %1231 }
 0x3c9   :  { %v506_v3 = vsel %vm490_vm5, %v1232_v2, 0.0 }
 0x3ca   :  { %507 = vadd.xlane.f32.xlu1 %v506_v3 }
 0x453   :  { %v505_v10 = vpop.xlane.xlu0 %504 }
 0x454   :  { %1233 = vrcp.f32 %v505_v10 }
 0x457   :  { %v508_v11 = vpop.xlane.xlu1 %507 }
 0x458   :  { %1235 = vrcp.f32 %v508_v11  ;;  %v970_v11 = vld [vmem:[#allocation2 + $0x121] ss:$0 sm:$0xff] }
 0x45e   :  { %v1234_v12 = vpop.eup %1233 }
 0x45f   :  { %v511_v13 = vmul.f32 %v1234_v12, %v1230_v0 }
 0x461   :  { %1096 = vmatprep.mubr.msk.f32.mxu0 %vm490_vm5, %v511_v13 }
 0x462   :  { %v1236_v14 = vpop.eup %1235 }
 0x463   :  { %v512_v15 = vmul.f32 %v1236_v14, %v1232_v2  ;;  %v64_v2 = vld [vmem:[#allocation2 + $0x118] sm:$0xff] }
 0x464   :  { %v1218_v3 = vpack.c.bf16 %v64_v2, %v63_v1 }
 0x465   :  { %1097 = vmatmul.mubr.msk.f32.vlgmr.msra.gmra.mrb[6].mxu0 %vm490_vm5, %v512_v15 }
 0x466   :  { %1201 = vmatpush3.bf16.msra.mxu0 %v1198_v36 }
 0x538   :  { %v1098_v16 = vpop.f32.mrb[6].mxu0 }
 0x539   :  { %v585_v17 = vpop.f32.mrb[7].mxu0 }
 0x53a   :  { %1107 = vmatprep.mubr.msk.f32.mxu1 %vm169_vm3, %v585_v17 }
 0x53b   :  { %1108 = vmatmul.mubr.msk.f32.vlgmr.msra.gmra.mrb[4].mxu1 %vm169_vm3, %v1098_v16 }
 0x60e   :  { %v1109_v18 = vpop.f32.mrb[4].mxu1 }
 0x60f   :  { %v676_v19 = vadd.f32 %v1109_v18, %v1342_v39  ;;  %v666_v20 = vpop.f32.mrb[5].mxu1  ;;  %v1202_v39 = vpack.c.bf16 %v56_v38, %v55_v37  ;;  %v973_v37 = vld [vmem:[#allocation2 + $0x124] ss:$0 sm:$0xff] }
 0x610   :  { %v675_v21 = vadd.f32 %v666_v20, %v1344_v40  ;;  %v57_v40 = vld [vmem:[#allocation2 + $0xe0] sm:$0xff] }
 0x611   :  { %v680_v23 = vsel %vm169_vm3, %v676_v19, 0.0  ;;  %1203 = vmatprep.subr.bf16.mxu0 %v1202_v39  ;;  %v1206_v43 = vpack.c.bf16 %v58_v41, %v57_v40 }
 0x612   :  { %v677_v22 = vsel %vm169_vm3, %v675_v21, 0.0  ;;  %1205 = vmatpush3.bf16.msra.mxu0 %v1202_v39  ;;  %v974_v39 = vld [vmem:[#allocation2 + $0x125] ss:$0 sm:$0xff] }
 0x613   :  { %678 = vadd.xlane.f32.xlu1 %v677_v22  ;;  %1207 = vmatprep.subr.bf16.mxu1 %v1206_v43 }
 0x614   :  { %1209 = vmatpush3.bf16.msra.mxu1 %v1206_v43 }
 0x615   :  { %1211 = vmatprep.subr.bf16.mxu1 %v1210_v45 }
 0x617   :  { %681 = vadd.xlane.f32.xlu1 %v680_v23 }
 0x618   :  { %1213 = vmatpush3.bf16.msra.mxu1 %v1210_v45 }
 0x619   :  { %1215 = vmatprep.subr.bf16.mxu1 %v1214_v48 }
 0x61c   :  { %1217 = vmatpush3.bf16.msra.mxu1 %v1214_v48 }
 0x61d   :  { %1219 = vmatprep.subr.bf16.mxu1 %v1218_v3 }
 0x620   :  { %1221 = vmatpush3.bf16.msra.mxu1 %v1218_v3 }
 0x6a0   :  { %v679_v24 = vpop.xlane.xlu1 %678 }
 0x6a1   :  { %v684_v25 = vmul.f32 0.03125, %v679_v24 }
 0x6a3   :  { %v686_v26 = vsub.f32 %v675_v21, %v684_v25 }
 0x6a4   :  { %v682_v27 = vpop.xlane.xlu1 %681 }
 0x6a5   :  { %v685_v28 = vmul.f32 0.03125, %v682_v27  ;;  %v688_v29 = vmul.f32 %v686_v26, %v686_v26 }
 0x6a7   :  { %v687_v30 = vsub.f32 %v676_v19, %v685_v28  ;;  %v690_v31 = vsel %vm169_vm3, %v688_v29, 0.0 }
 0x6a8   :  { %691 = vadd.xlane.f32.xlu1 %v690_v31 }
 0x6a9   :  { %v689_v32 = vmul.f32 %v687_v30, %v687_v30 }
 0x6ab   :  { %v693_v33 = vsel %vm169_vm3, %v689_v32, 0.0 }
 0x6ac   :  { %694 = vadd.xlane.f32.xlu1 %v693_v33 }
 0x735   :  { %v692_v49 = vpop.xlane.xlu1 %691 }
 0x736   :  { %v696_v50 = vmul.f32 0.03125, %v692_v49 }
 0x738   :  { %v698_v51 = vadd.f32 1e-05, %v696_v50 }
 0x739   :  { %v695_v52 = vpop.xlane.xlu1 %694 }
 0x73a   :  { %1237 = vrsqrt.f32 %v698_v51  ;;  %v697_v53 = vmul.f32 0.03125, %v695_v52 }
 0x73c   :  { %v699_v54 = vadd.f32 1e-05, %v697_v53 }
 0x73e   :  { %1239 = vrsqrt.f32 %v699_v54 }
 0x744   :  { %v1238_v55 = vpop.eup %1237 }
 0x745   :  { %v702_v57 = vmul.f32 %v1238_v55, %v686_v26 }
 0x747   :  { %v708_v59 = vmul.f32 %v965_v56, %v702_v57 }
 0x748   :  { %v1240_v60 = vpop.eup %1239 }
 0x749   :  { %v703_v61 = vmul.f32 %v1240_v60, %v687_v30  ;;  %v714_v62 = vadd.f32 %v966_v58, %v708_v59 }
 0x74b   :  { %v709_v63 = vmul.f32 %v965_v56, %v703_v61  ;;  %1118 = vmatprep.mubr.msk.f32.mxu0 %vm169_vm3, %v714_v62 }
 0x74d   :  { %v715_v0 = vadd.f32 %v966_v58, %v709_v63 }
 0x74f   :  { %1119 = vmatmul.mubr.msk.f32.vlgmr.msra.gmra.mrb[8].mxu0 %vm169_vm3, %v715_v0 }
 0x822   :  { %v1120_v5 = vpop.f32.mrb[8].mxu0 }
 0x823   :  { %v798_v6 = vadd.f32 %v1120_v5, %v967_v4  ;;  %v792_v7 = vpop.f32.mrb[9].mxu0 }
 0x824   :  { %v793_v8 = vadd.f32 %v967_v4, %v792_v7 }
 0x825   :  { %v802_v10 = vmax.f32 %v798_v6, 0.0 }
 0x826   :  { %v801_v9 = vmax.f32 %v793_v8, 0.0 }
 0x828   :  { %1137 = vmatprep.mubr.msk.f32.mxu1 %vm87_vm0, %v801_v9 }
 0x829   :  { %1138 = vmatmul.mubr.msk.f32.vlgmr.msra.gmra.mrb[6].mxu1 %vm87_vm0, %v802_v10 }
 0x8fc   :  { %v1139_v12 = vpop.f32.mrb[6].mxu1 }
 0x8fd   :  { %v879_v13 = vpop.f32.mrb[7].mxu1  ;;  %v885_v14 = vadd.f32 %v1139_v12, %v970_v11 }
 0x8fe   :  { %v880_v15 = vadd.f32 %v970_v11, %v879_v13 }
 0x8ff   :  { %v889_v18 = vadd.f32 %v885_v14, %v715_v0 }
 0x900   :  { %v888_v16 = vadd.f32 %v880_v15, %v714_v62 }
 0x901   :  { %v893_v19 = vsel %vm169_vm3, %v889_v18, 0.0 }
 0x902   :  { %v890_v17 = vsel %vm169_vm3, %v888_v16, 0.0 }
 0x903   :  { %891 = vadd.xlane.f32.xlu1 %v890_v17 }
 0x907   :  { %894 = vadd.xlane.f32.xlu1 %v893_v19 }
 0x990   :  { %v892_v20 = vpop.xlane.xlu1 %891 }
 0x991   :  { %v896_v21 = vmul.f32 0.03125, %v892_v20 }
 0x993   :  { %v898_v22 = vsub.f32 %v888_v16, %v896_v21 }
 0x994   :  { %v895_v23 = vpop.xlane.xlu1 %894 }
 0x995   :  { %v897_v24 = vmul.f32 0.03125, %v895_v23  ;;  %v900_v25 = vmul.f32 %v898_v22, %v898_v22 }
 0x997   :  { %v899_v26 = vsub.f32 %v889_v18, %v897_v24  ;;  %v902_v27 = vsel %vm169_vm3, %v900_v25, 0.0 }
 0x998   :  { %903 = vadd.xlane.f32.xlu1 %v902_v27 }
 0x999   :  { %v901_v28 = vmul.f32 %v899_v26, %v899_v26 }
 0x99b   :  { %v905_v29 = vsel %vm169_vm3, %v901_v28, 0.0 }
 0x99c   :  { %906 = vadd.xlane.f32.xlu0 %v905_v29 }
 0xa25   :  { %v904_v30 = vpop.xlane.xlu1 %903 }
 0xa26   :  { %v908_v31 = vmul.f32 0.03125, %v904_v30 }
 0xa28   :  { %v910_v32 = vadd.f32 1e-05, %v908_v31 }
 0xa29   :  { %v907_v33 = vpop.xlane.xlu0 %906 }
 0xa2a   :  { %1241 = vrsqrt.f32 %v910_v32  ;;  %v909_v34 = vmul.f32 0.03125, %v907_v33 }
 0xa2c   :  { %v911_v35 = vadd.f32 1e-05, %v909_v34 }
 0xa2e   :  { %1243 = vrsqrt.f32 %v911_v35 }
 0xa34   :  { %v1242_v36 = vpop.eup %1241 }
 0xa35   :  { %v914_v38 = vmul.f32 %v1242_v36, %v898_v22 }
 0xa37   :  { %v920_v40 = vmul.f32 %v973_v37, %v914_v38 }
 0xa38   :  { %v1244_v41 = vpop.eup %1243 }
 0xa39   :  { %v915_v42 = vmul.f32 %v1244_v41, %v899_v26  ;;  %v926_v43 = vadd.f32 %v974_v39, %v920_v40 }
 0xa3b   :  { %v921_v44 = vmul.f32 %v973_v37, %v915_v42  ;;  %928 = vst.msk [vmem:[#allocation5] sm:$0xff] %vm169_vm3, %v926_v43 }
 0xa3d   :  { %v927_v45 = vadd.f32 %v974_v39, %v921_v44 }
 0xa3f   :  { %929 = vst.msk [vmem:[#allocation5 + $0x8] sm:$0xff] %vm169_vm3, %v927_v45 }
 0xa40   :  { %1278 = shalt.err (!%p1275_p12)
}
 0xa41   :  { %s1279_s9 = scalar_lea.hbm %s1410_s3, 256 }
 0xa42   :  { %p1280_p13 = scmp.ne.s32.totalorder %s1410_s3, %s1279_s9  ;;  %p1283_p0 = scmp.lt.u32.totalorder %s1279_s9, %s1410_s3 }
 0xa44   :  { %p1285_p1 = pnand %p1283_p0, %p1280_p13 }
 0xa46   :  { %1288 = shalt.err (!%p1285_p1)
}
 0xa47   :  { %941 = dma.vmem_to_hbm [thread:$0]  %s936_s5, 256, %s1410_s3, [#allocation4], %s1294_s22, %s1294_s22, %s1295_s23  }
 0xa48   :  { %1291 = dma.done.wait [#allocation4], 256  }
 0xa49   :  { %1292 = vsyncadd [#allocation4], 4294967040 }
 0xa4a   :  { %945 = vsyncpa [#allocation3], 1 }
 0xa4b   :  { %946 = vsyncpa [#allocation4], 1 }

</bundles_post_ra>
